<compile_context>
chip_gen: v7x
topology: tpu7x:2x2x1
jax: 0.10.0
libtpu: 0.0.40
codegen_flags: <defaults>
</compile_context>

<pallas_src>
import math

import jax
import jax.numpy as jnp
from jax import lax
from jax.experimental import pallas as pl
from jax.experimental.pallas import tpu as pltpu


_AREA_EPS = 1e-10   # TODO(synk): pytorch3d's kEpsilon differs slightly
_CHUNK = 256        # faces per streamed SMEM chunk (double-buffered)

# packed per-face attribute rows (face table); blur adds 9 more rows
_ROWS_BASE = ("dx0", "dy0", "c0", "dx1", "dy1", "c1", "dx2", "dy2", "c2",
              "z0", "z1", "z2", "jmin", "jmax", "imin", "imax")
_ROWS_BLUR = ("x0", "y0", "x1", "y1", "x2", "y2", "il0", "il1", "il2")


# ----------------------------------------------------------------------------
# shared math (Kernel A and the pure-JAX reference use the same formulas)
# ----------------------------------------------------------------------------
def _project_verts(m, vx, vy, vz, vw, W, H, z_rate):
    """m: 4x4 nested list of scalars; v*: (1,P) rows of homogeneous verts."""
    tx = m[0][0] * vx + m[0][1] * vy + m[0][2] * vz + m[0][3] * vw
    ty = m[1][0] * vx + m[1][1] * vy + m[1][2] * vz + m[1][3] * vw
    tz = m[2][0] * vx + m[2][1] * vy + m[2][2] * vz + m[2][3] * vw
    inv_z = 1.0 / tz   # TODO(synk): no znear / z==0 guard (pytorch3d culls with znear)
    px = tx * inv_z
    py = ty * inv_z
    pz = tz / z_rate
    ndc_x = -W / H + (2.0 * W / H * px + W / H) / W
    ndc_y = -1.0 + (2.0 * py + 1.0) / H
    return ndc_x, ndc_y, pz


def _face_attrs(screen, faces, S, blur):
    """Hoisted face-only math.  screen: (N,P,3), faces: (F,3)."""
    tri = screen[:, faces, :]                                   # (N,F,3,3)
    x0, y0, z0 = tri[:, :, 0, 0], tri[:, :, 0, 1], tri[:, :, 0, 2]
    x1, y1, z1 = tri[:, :, 1, 0], tri[:, :, 1, 1], tri[:, :, 1, 2]
    x2, y2, z2 = tri[:, :, 2, 0], tri[:, :, 2, 1], tri[:, :, 2, 2]
    dx0, dy0 = x1 - x0, y1 - y0
    dx1, dy1 = x2 - x1, y2 - y1
    dx2, dy2 = x0 - x2, y0 - y2
    c0 = dy0 * x0 - dx0 * y0        # e_k(p) = dx_k*yf - dy_k*xf + c_k
    c1 = dy1 * x1 - dx1 * y1
    c2 = dy2 * x2 - dx2 * y2
    area = dx0 * (y2 - y0) - dy0 * (x2 - x0)
    valid = jnp.abs(area) > _AREA_EPS

    # Conservative per-face bbox in PIXEL-INDEX space (xf(j)=1-(2j+1)/S is
    # decreasing in j, same for yf(i)), expanded by sqrt(blur) in NDC plus one
    # pixel of slack.  Degenerate faces get an empty bbox so the in-kernel
    # bbox cull also removes them (replaces the old 'ok' row + gate).
    margin = math.sqrt(blur) if blur > 0.0 else 0.0
    Sf = float(S)
    xmin = jnp.minimum(x0, jnp.minimum(x1, x2)) - margin
    xmax = jnp.maximum(x0, jnp.maximum(x1, x2)) + margin
    ymin = jnp.minimum(y0, jnp.minimum(y1, y2)) - margin
    ymax = jnp.maximum(y0, jnp.maximum(y1, y2)) + margin
    jmin = ((1.0 - xmax) * Sf - 1.0) * 0.5 - 1.0
    jmax = ((1.0 - xmin) * Sf - 1.0) * 0.5 + 1.0
    imin = ((1.0 - ymax) * Sf - 1.0) * 0.5 - 1.0
    imax = ((1.0 - ymin) * Sf - 1.0) * 0.5 + 1.0
    big = jnp.float32(4e9)
    jmin = jnp.where(valid, jmin, big)
    jmax = jnp.where(valid, jmax, -big)
    imin = jnp.where(valid, imin, big)
    imax = jnp.where(valid, imax, -big)

    attrs = dict(dx0=dx0, dy0=dy0, c0=c0, dx1=dx1, dy1=dy1, c1=c1,
                 dx2=dx2, dy2=dy2, c2=c2, z0=z0, z1=z1, z2=z2,
                 jmin=jmin, jmax=jmax, imin=imin, imax=imax)
    if blur > 0.0:
        attrs.update(x0=x0, y0=y0, x1=x1, y1=y1, x2=x2, y2=y2,
                     il0=1.0 / (dx0 * dx0 + dy0 * dy0 + 1e-12),
                     il1=1.0 / (dx1 * dx1 + dy1 * dy1 + 1e-12),
                     il2=1.0 / (dx2 * dx2 + dy2 * dy2 + 1e-12))
    return attrs, valid


def _pack_face_table(attrs, blur, Fpad):
    names = _ROWS_BASE + (_ROWS_BLUR if blur > 0.0 else ())
    F = attrs["dx0"].shape[1]
    pad_vals = {"jmin": 4e9, "imin": 4e9, "jmax": -4e9, "imax": -4e9}
    rows = [jnp.pad(attrs[k], ((0, 0), (0, Fpad - F)),
                    constant_values=pad_vals.get(k, 0.0)) for k in names]
    return jnp.stack(rows, axis=1).astype(jnp.float32)          # (N,n_rows,Fpad)


# ----------------------------------------------------------------------------
# Kernel A: transform_points_mvs
# ----------------------------------------------------------------------------
def _make_transform_kernel(W_img, H_img, z_rate):
    def kernel(m_ref, v_ref, o_ref):
        n = pl.program_id(0)
        m = [[m_ref[n, 4 * i + j] for j in range(4)] for i in range(4)]
        vx = v_ref[0, 0:1, :]
        vy = v_ref[0, 1:2, :]
        vz = v_ref[0, 2:3, :]
        vw = v_ref[0, 3:4, :]
        ndc_x, ndc_y, pz = _project_verts(m, vx, vy, vz, vw,
                                          W_img, H_img, z_rate)
        o_ref[0] = jnp.concatenate([ndc_x, ndc_y, pz], axis=0)
    return kernel


def transform_verts(m_flat, verts_lanes, W_img, H_img, z_rate):
    """m_flat: (N,16) f32 matrices (SMEM); verts_lanes: (N,4,Ppad) f32."""
    N, _, Ppad = verts_lanes.shape
    return pl.pallas_call(
        _make_transform_kernel(W_img, H_img, z_rate),
        out_shape=jax.ShapeDtypeStruct((N, 3, Ppad), jnp.float32),
        grid_spec=pltpu.PrefetchScalarGridSpec(
            num_scalar_prefetch=0, grid=(N,),
            in_specs=[pl.BlockSpec(memory_space=pltpu.MemorySpace.SMEM),
                      pl.BlockSpec((1, 4, Ppad), lambda n: (n, 0, 0))],
            out_specs=pl.BlockSpec((1, 3, Ppad), lambda n: (n, 0, 0))),
        compiler_params=pltpu.CompilerParams(
            dimension_semantics=("parallel",)),
    )(m_flat, verts_lanes)


# ----------------------------------------------------------------------------
# Kernel B: coverage rasterization -> per-pixel count (lane-dense int8)
# ----------------------------------------------------------------------------
def _make_raster_kernel(S, K, TR, TC, chunk, n_chunks, blur, out_dtype):
    Sf = float(S)

    def kernel(fc_hbm, cnt_ref, fc_smem, dma_sem, acc_ref):
        n = pl.program_id(0)
        r = pl.program_id(1)
        c = pl.program_id(2)

        def start_fetch(ch, slot):         # HBM face chunk -> SMEM slot
            pltpu.make_async_copy(
                fc_hbm.at[n, :, pl.ds(ch * chunk, chunk)],
                fc_smem.at[slot], dma_sem.at[slot]).start()

        def wait_fetch(ch, slot):
            pltpu.make_async_copy(
                fc_hbm.at[n, :, pl.ds(ch * chunk, chunk)],
                fc_smem.at[slot], dma_sem.at[slot]).wait()

        start_fetch(0, 0)

        # pixel NDC coords of this (TR,TC) tile (pytorch3d: +X left, +Y up);
        # 2-D iota, no per-pixel div/mod
        ii = (r * TR + lax.broadcasted_iota(jnp.int32, (TR, TC), 0)
              ).astype(jnp.float32)
        jj = (c * TC + lax.broadcasted_iota(jnp.int32, (TR, TC), 1)
              ).astype(jnp.float32)
        xf = 1.0 - (2.0 * jj + 1.0) / Sf
        yf = 1.0 - (2.0 * ii + 1.0) / Sf

        # tile bounds in pixel-index space (scalars) for the bbox cull
        j_lo = (c * TC).astype(jnp.float32)
        j_hi = (c * TC + (TC - 1)).astype(jnp.float32)
        i_lo = (r * TR).astype(jnp.float32)
        i_hi = (r * TR + (TR - 1)).astype(jnp.float32)

        acc_ref[...] = jnp.zeros((TR, TC), jnp.int32)

        def chunk_body(ch, carry):
            slot = ch & 1
            wait_fetch(ch, slot)

            @pl.when(ch + 1 < n_chunks)            # prefetch next face chunk
            def _():
                start_fetch(ch + 1, 1 - slot)

            def face_body(f, fcarry):
                # scalar bbox-vs-tile cull (also drops degenerate/pad faces)
                jmn = fc_smem[slot, 12, f]
                jmx = fc_smem[slot, 13, f]
                imn = fc_smem[slot, 14, f]
                imx = fc_smem[slot, 15, f]
                hit = ((jmn <= j_hi) & (jmx >= j_lo)
                       & (imn <= i_hi) & (imx >= i_lo))

                @pl.when(hit)
                def _():
                    dx0 = fc_smem[slot, 0, f]
                    dy0 = fc_smem[slot, 1, f]
                    c0 = fc_smem[slot, 2, f]
                    dx1 = fc_smem[slot, 3, f]
                    dy1 = fc_smem[slot, 4, f]
                    c1 = fc_smem[slot, 5, f]
                    dx2 = fc_smem[slot, 6, f]
                    dy2 = fc_smem[slot, 7, f]
                    c2 = fc_smem[slot, 8, f]
                    z0 = fc_smem[slot, 9, f]
                    z1 = fc_smem[slot, 10, f]
                    z2 = fc_smem[slot, 11, f]

                    e0 = dx0 * yf - dy0 * xf + c0
                    e1 = dx1 * yf - dy1 * xf + c1
                    e2 = dx2 * yf - dy2 * xf + c2
                    mn = jnp.minimum(e0, jnp.minimum(e1, e2))
                    mx = jnp.maximum(e0, jnp.maximum(e1, e2))
                    inside = (mn >= 0.0) | (mx <= 0.0)
                    ssum = e0 + e1 + e2
                    num = e1 * z0 + e2 * z1 + e0 * z2
                    in_front = (num * ssum) >= 0.0   # z-sign test, divide-free
                    covered = inside & in_front

                    if blur > 0.0:                   # faces near an edge
                        x0 = fc_smem[slot, 16, f]
                        y0 = fc_smem[slot, 17, f]
                        x1 = fc_smem[slot, 18, f]
                        y1 = fc_smem[slot, 19, f]
                        x2 = fc_smem[slot, 20, f]
                        y2 = fc_smem[slot, 21, f]
                        il0 = fc_smem[slot, 22, f]
                        il1 = fc_smem[slot, 23, f]
                        il2 = fc_smem[slot, 24, f]

                        def seg_d2(ax, ay, dxe, dye, inv_l2):
                            apx = xf - ax
                            apy = yf - ay
                            tt = jnp.clip((apx * dxe + apy * dye) * inv_l2,
                                          0.0, 1.0)
                            ex = apx - tt * dxe
                            ey = apy - tt * dye
                            return ex * ex + ey * ey

                        d2 = jnp.minimum(
                            seg_d2(x0, y0, dx0, dy0, il0),
                            jnp.minimum(seg_d2(x1, y1, dx1, dy1, il1),
                                        seg_d2(x2, y2, dx2, dy2, il2)))
                        # NB: pytorch3d compares the *squared* distance to
                        # blur_radius; so do we.
                        covered = covered | ((d2 < blur) & in_front)

                    acc_ref[...] = acc_ref[...] + covered.astype(jnp.int32)

                return fcarry

            lax.fori_loop(0, chunk, face_body, 0, unroll=2)
            return carry

        lax.fori_loop(0, n_chunks, chunk_body, 0)

        cnt_ref[0] = jnp.minimum(acc_ref[...], K).astype(out_dtype)

    return kernel


def rasterize_count(fc_table, S, K, blur):
    """fc_table: (N, n_rows, Fpad) f32 in HBM -> (N, S, S) coverage counts."""
    N, n_rows, Fpad = fc_table.shape
    n_chunks = Fpad // _CHUNK
    # Tile default (32,256): 8 f32 vregs per tile array, so xf/yf/temps stay
    # in registers and per-face scalar cost is amortized over 8 vregs.
    # (Sweep TR/TC per chip; VMEM use here is ~50 KiB, far under v7x's 64 MiB.)
    TR = 32 if S % 32 == 0 else S
    TC = 256 if S % 256 == 0 else (128 if S % 128 == 0 else S)
    out_dtype = jnp.int8 if K <= 127 else jnp.int32
    grid = (N, S // TR, S // TC)
    return pl.pallas_call(
        _make_raster_kernel(S, K, TR, TC, _CHUNK, n_chunks, blur, out_dtype),
        out_shape=jax.ShapeDtypeStruct((N, S, S), out_dtype),
        grid_spec=pltpu.PrefetchScalarGridSpec(
            num_scalar_prefetch=0, grid=grid,
            in_specs=[pl.BlockSpec(memory_space=pl.ANY)],  # face table in HBM
            out_specs=pl.BlockSpec((1, TR, TC), lambda n, r, c: (n, r, c)),
            scratch_shapes=[
                pltpu.SMEM((2, n_rows, _CHUNK), jnp.float32),  # dbl-buffered chunks
                pltpu.SemaphoreType.DMA((2,)),
                pltpu.VMEM((TR, TC), jnp.int32),               # coverage accum
            ]),
        compiler_params=pltpu.CompilerParams(
            dimension_semantics=("parallel", "parallel", "parallel")),
    )(fc_table)


# ----------------------------------------------------------------------------
# Forward wrapper (glue)
# ----------------------------------------------------------------------------
def offline_rasterizer_forward(verts_padded, faces, matrix, img_size, params):
    N, P, _ = verts_padded.shape
    W_img = float(img_size[0, 0, 0])
    H_img = float(img_size[0, 0, 1])
    S = int(params.render_image_size)
    K = int(params.faces_per_pixel)
    blur = float(params.blur_radius)
    z_rate = float(params.z_axis_transform_rate)

    # --- transform_points_mvs (Kernel A) ---
    Ppad = max(128, ((P + 127) // 128) * 128)
    vh = jnp.concatenate([verts_padded.astype(jnp.float32),
                          jnp.ones((N, P, 1), jnp.float32)], axis=2)
    vhT = jnp.transpose(vh, (0, 2, 1))                           # (N,4,P)
    vhT = jnp.pad(vhT, ((0, 0), (0, 0), (0, Ppad - P)), constant_values=1.0)
    m_flat = matrix.astype(jnp.float32).reshape(N, 16)
    ndc_lanes = transform_verts(m_flat, vhT, W_img, H_img, z_rate)  # (N,3,Ppad)
    verts_ndc = jnp.transpose(ndc_lanes, (0, 2, 1))[:, :P, :]       # (N,P,3)

    # --- camera: R = diag(-1,-1,1), T = 0, orthographic f=1, p=0 ---
    screen = verts_ndc * jnp.array([-1.0, -1.0, 1.0], jnp.float32)

    # --- hoisted face-only math + coverage rasterization (Kernel B) ---
    F = faces.shape[0]
    attrs, _ = _face_attrs(screen, faces, S, blur)
    Fpad = max(_CHUNK, ((F + _CHUNK - 1) // _CHUNK) * _CHUNK)
    fc_table = _pack_face_table(attrs, blur, Fpad)                  # (N,rows,Fpad)

    cnt = rasterize_count(fc_table, S, K, blur)                     # (N,S,S) i8
    # TODO(synk): top-K z-sorted pix_to_face semantics not reproduced; the mask
    # fills the first `count` of the K slots (unordered coverage equivalence).
    mask = cnt[..., None] > jnp.arange(K, dtype=cnt.dtype)
    return mask                                                     # (N,S,S,K)


# ----------------------------------------------------------------------------
# Pure-JAX reference (same math, no Pallas, no culling)
# ----------------------------------------------------------------------------
def reference_forward(verts_padded, faces, matrix, img_size, params):
    N, P, _ = verts_padded.shape
    W_img = float(img_size[0, 0, 0])
    H_img = float(img_size[0, 0, 1])
    S = int(params.render_image_size)
    K = int(params.faces_per_pixel)
    blur = float(params.blur_radius)
    z_rate = float(params.z_axis_transform_rate)

    vh = jnp.concatenate([verts_padded.astype(jnp.float32),
                          jnp.ones((N, P, 1), jnp.float32)], axis=2)
    vhT = jnp.transpose(vh, (0, 2, 1))
    mat = matrix.astype(jnp.float32)
    ndc = []
    for nn in range(N):
        m = [[mat[nn, i, j] for j in range(4)] for i in range(4)]
        nx, ny, pz = _project_verts(m, vhT[nn, 0:1, :], vhT[nn, 1:2, :],
                                    vhT[nn, 2:3, :], vhT[nn, 3:4, :],
                                    W_img, H_img, z_rate)
        ndc.append(jnp.concatenate([nx, ny, pz], axis=0))           # (3,P)
    verts_ndc = jnp.transpose(jnp.stack(ndc, 0), (0, 2, 1))
    screen = verts_ndc * jnp.array([-1.0, -1.0, 1.0], jnp.float32)
    attrs, valid = _face_attrs(screen, faces, S, blur)

    Sf = float(S)
    jj = jnp.arange(S, dtype=jnp.float32)
    ii = jnp.arange(S, dtype=jnp.float32)
    Xf = jnp.broadcast_to((1.0 - (2.0 * jj + 1.0) / Sf)[None, :], (S, S)
                          ).reshape(S * S, 1)
    Yf = jnp.broadcast_to((1.0 - (2.0 * ii + 1.0) / Sf)[:, None], (S, S)
                          ).reshape(S * S, 1)

    masks = []
    for nn in range(N):
        def a(k):
            return attrs[k][nn][None, :]
        e0 = a("dx0") * Yf - a("dy0") * Xf + a("c0")
        e1 = a("dx1") * Yf - a("dy1") * Xf + a("c1")
        e2 = a("dx2") * Yf - a("dy2") * Xf + a("c2")
        mn = jnp.minimum(e0, jnp.minimum(e1, e2))
        mx = jnp.maximum(e0, jnp.maximum(e1, e2))
        inside = (mn >= 0.0) | (mx <= 0.0)
        ssum = e0 + e1 + e2
        num = e1 * a("z0") + e2 * a("z1") + e0 * a("z2")
        in_front = (num * ssum) >= 0.0
        covered = inside & in_front
        if blur > 0.0:
            def seg_d2(ax, ay, dxe, dye, inv_l2):
                apx = Xf - ax
                apy = Yf - ay
                tt = jnp.clip((apx * dxe + apy * dye) * inv_l2, 0.0, 1.0)
                ex = apx - tt * dxe
                ey = apy - tt * dye
                return ex * ex + ey * ey
            d2 = jnp.minimum(
                seg_d2(a("x0"), a("y0"), a("dx0"), a("dy0"), a("il0")),
                jnp.minimum(
                    seg_d2(a("x1"), a("y1"), a("dx1"), a("dy1"), a("il1")),
                    seg_d2(a("x2"), a("y2"), a("dx2"), a("dy2"), a("il2"))))
            covered = covered | ((d2 < blur) & in_front)
        covered = covered & valid[nn][None, :]
        cnt = covered.astype(jnp.int32).sum(axis=1)
        masks.append(cnt[:, None] > jnp.arange(K, dtype=jnp.int32))
    return jnp.stack(masks, 0).reshape(N, S, S, K)


# ----------------------------------------------------------------------------
if __name__ == "__main__":
    class Params:
        device = None
        render_image_size = 128
        blur_radius = 0.0
        faces_per_pixel = 2
        z_axis_transform_rate = 4.0

    def make_inputs(seed, N, F, W, H, tri_size):
        key = jax.random.PRNGKey(seed)
        kc, ko, kz, km = jax.random.split(key, 4)
        centers = jax.random.uniform(kc, (N, F, 1, 2), minval=2.0, maxval=W - 2.0)
        offsets = jax.random.uniform(ko, (N, F, 3, 2),
                                     minval=-tri_size, maxval=tri_size)
        offsets = offsets.at[:, 0].set(0.0)      # face 0 degenerate -> culled
        xy = (centers + offsets).reshape(N, F * 3, 2)
        z = jax.random.uniform(kz, (N, F * 3, 1), minval=0.9, maxval=1.1)
        verts = jnp.concatenate([xy, z], axis=2).astype(jnp.float32)
        faces = jnp.arange(F * 3, dtype=jnp.int32).reshape(F, 3)
        base = jnp.eye(4, dtype=jnp.float32)
        noise = 0.05 * jax.random.normal(km, (N, 4, 4), dtype=jnp.float32)
        noise = noise.at[:, 2:, :].set(0.0)      # keep z / homogeneous rows exact
        matrix = base[None, ...] + noise
        img_size = jnp.array([[[float(W), float(H)]]], jnp.float32)
        return verts, faces, matrix, img_size

    def run_case(params, seed, N, F, tri_size):
        S = params.render_image_size
        K = params.faces_per_pixel
        verts, faces, matrix, img_size = make_inputs(seed, N, F,
                                                     float(S), float(S), tri_size)
        mask = offline_rasterizer_forward(verts, faces, matrix, img_size, params)
        mask = jax.block_until_ready(mask)
        assert mask.shape == (N, S, S, K)
        assert mask.dtype == jnp.bool_
        ref = reference_forward(verts, faces, matrix, img_size, params)
        mismatch = float(jnp.mean((mask != ref).astype(jnp.float32)))
        assert mismatch <= 0.01, f"mask mismatch fraction {mismatch}"

    # coverage path (blur_radius == 0), multi-chunk face table (2 chunks)
    p0 = Params()
    run_case(p0, seed=0, N=2, F=300, tri_size=5.0)

    # blur path (blur_radius > 0), single chunk
    p1 = Params()
    p1.render_image_size = 64
    p1.blur_radius = 4e-3
    p1.faces_per_pixel = 1
    run_case(p1, seed=1, N=1, F=40, tri_size=4.0)

    print("KERNEL_OK")
</pallas_src>

<mosaic_0001>
module attributes {stable_mosaic.version = 11 : i64} {
  func.func @kernel(%arg0: i32, %arg1: memref<2x16xf32, #tpu.memory_space<smem>>, %arg2: memref<1x4x1024xf32, #tpu.memory_space<vmem>>, %arg3: memref<1x3x1024xf32, #tpu.memory_space<vmem>>) attributes {dimension_semantics = [#tpu.dimension_semantics<parallel>], iteration_bounds = array<i64: 2>, scalar_prefetch = 0 : i64, scratch_operands = 0 : i64, tpu.core_type = #tpu.core_type<tc>, window_params = [{transform_indices = @transform_0, window_bounds = array<i64: 2, 16>}, {transform_indices = @transform_1, window_bounds = array<i64: 1, 4, 1024>}, {transform_indices = @transform_2, window_bounds = array<i64: 1, 3, 1024>}]} {
    %0 = arith.index_cast %arg0 : i32 to index
    %c0 = arith.constant 0 : index
    %1 = memref.load %arg1[%0, %c0] : memref<2x16xf32, #tpu.memory_space<smem>>
    %2 = arith.index_cast %arg0 : i32 to index
    %c1 = arith.constant 1 : index
    %3 = memref.load %arg1[%2, %c1] : memref<2x16xf32, #tpu.memory_space<smem>>
    %4 = arith.index_cast %arg0 : i32 to index
    %c2 = arith.constant 2 : index
    %5 = memref.load %arg1[%4, %c2] : memref<2x16xf32, #tpu.memory_space<smem>>
    %6 = arith.index_cast %arg0 : i32 to index
    %c3 = arith.constant 3 : index
    %7 = memref.load %arg1[%6, %c3] : memref<2x16xf32, #tpu.memory_space<smem>>
    %8 = arith.index_cast %arg0 : i32 to index
    %c4 = arith.constant 4 : index
    %9 = memref.load %arg1[%8, %c4] : memref<2x16xf32, #tpu.memory_space<smem>>
    %10 = arith.index_cast %arg0 : i32 to index
    %c5 = arith.constant 5 : index
    %11 = memref.load %arg1[%10, %c5] : memref<2x16xf32, #tpu.memory_space<smem>>
    %12 = arith.index_cast %arg0 : i32 to index
    %c6 = arith.constant 6 : index
    %13 = memref.load %arg1[%12, %c6] : memref<2x16xf32, #tpu.memory_space<smem>>
    %14 = arith.index_cast %arg0 : i32 to index
    %c7 = arith.constant 7 : index
    %15 = memref.load %arg1[%14, %c7] : memref<2x16xf32, #tpu.memory_space<smem>>
    %16 = arith.index_cast %arg0 : i32 to index
    %c8 = arith.constant 8 : index
    %17 = memref.load %arg1[%16, %c8] : memref<2x16xf32, #tpu.memory_space<smem>>
    %18 = arith.index_cast %arg0 : i32 to index
    %c9 = arith.constant 9 : index
    %19 = memref.load %arg1[%18, %c9] : memref<2x16xf32, #tpu.memory_space<smem>>
    %20 = arith.index_cast %arg0 : i32 to index
    %c10 = arith.constant 10 : index
    %21 = memref.load %arg1[%20, %c10] : memref<2x16xf32, #tpu.memory_space<smem>>
    %22 = arith.index_cast %arg0 : i32 to index
    %c11 = arith.constant 11 : index
    %23 = memref.load %arg1[%22, %c11] : memref<2x16xf32, #tpu.memory_space<smem>>
    %c0_0 = arith.constant 0 : index
    %c0_1 = arith.constant 0 : index
    %c0_2 = arith.constant 0 : index
    %24 = vector.load %arg2[%c0_0, %c0_1, %c0_2] : memref<1x4x1024xf32, #tpu.memory_space<vmem>>, vector<1x1x1024xf32>
    %25 = vector.shape_cast %24 : vector<1x1x1024xf32> to vector<1x1024xf32>
    %c0_3 = arith.constant 0 : index
    %c1_4 = arith.constant 1 : index
    %c0_5 = arith.constant 0 : index
    %26 = vector.load %arg2[%c0_3, %c1_4, %c0_5] : memref<1x4x1024xf32, #tpu.memory_space<vmem>>, vector<1x1x1024xf32>
    %27 = vector.shape_cast %26 : vector<1x1x1024xf32> to vector<1x1024xf32>
    %c0_6 = arith.constant 0 : index
    %c2_7 = arith.constant 2 : index
    %c0_8 = arith.constant 0 : index
    %28 = vector.load %arg2[%c0_6, %c2_7, %c0_8] : memref<1x4x1024xf32, #tpu.memory_space<vmem>>, vector<1x1x1024xf32>
    %29 = vector.shape_cast %28 : vector<1x1x1024xf32> to vector<1x1024xf32>
    %c0_9 = arith.constant 0 : index
    %c3_10 = arith.constant 3 : index
    %c0_11 = arith.constant 0 : index
    %30 = vector.load %arg2[%c0_9, %c3_10, %c0_11] : memref<1x4x1024xf32, #tpu.memory_space<vmem>>, vector<1x1x1024xf32>
    %31 = vector.shape_cast %30 : vector<1x1x1024xf32> to vector<1x1024xf32>
    %32 = vector.broadcast %1 : f32 to vector<1x1024xf32>
    %33 = arith.mulf %32, %25 : vector<1x1024xf32>
    %34 = vector.broadcast %3 : f32 to vector<1x1024xf32>
    %35 = arith.mulf %34, %27 : vector<1x1024xf32>
    %36 = arith.addf %33, %35 : vector<1x1024xf32>
    %37 = vector.broadcast %5 : f32 to vector<1x1024xf32>
    %38 = arith.mulf %37, %29 : vector<1x1024xf32>
    %39 = arith.addf %36, %38 : vector<1x1024xf32>
    %40 = vector.broadcast %7 : f32 to vector<1x1024xf32>
    %41 = arith.mulf %40, %31 : vector<1x1024xf32>
    %42 = arith.addf %39, %41 : vector<1x1024xf32>
    %43 = vector.broadcast %9 : f32 to vector<1x1024xf32>
    %44 = arith.mulf %43, %25 : vector<1x1024xf32>
    %45 = vector.broadcast %11 : f32 to vector<1x1024xf32>
    %46 = arith.mulf %45, %27 : vector<1x1024xf32>
    %47 = arith.addf %44, %46 : vector<1x1024xf32>
    %48 = vector.broadcast %13 : f32 to vector<1x1024xf32>
    %49 = arith.mulf %48, %29 : vector<1x1024xf32>
    %50 = arith.addf %47, %49 : vector<1x1024xf32>
    %51 = vector.broadcast %15 : f32 to vector<1x1024xf32>
    %52 = arith.mulf %51, %31 : vector<1x1024xf32>
    %53 = arith.addf %50, %52 : vector<1x1024xf32>
    %54 = vector.broadcast %17 : f32 to vector<1x1024xf32>
    %55 = arith.mulf %54, %25 : vector<1x1024xf32>
    %56 = vector.broadcast %19 : f32 to vector<1x1024xf32>
    %57 = arith.mulf %56, %27 : vector<1x1024xf32>
    %58 = arith.addf %55, %57 : vector<1x1024xf32>
    %59 = vector.broadcast %21 : f32 to vector<1x1024xf32>
    %60 = arith.mulf %59, %29 : vector<1x1024xf32>
    %61 = arith.addf %58, %60 : vector<1x1024xf32>
    %62 = vector.broadcast %23 : f32 to vector<1x1024xf32>
    %63 = arith.mulf %62, %31 : vector<1x1024xf32>
    %64 = arith.addf %61, %63 : vector<1x1024xf32>
    %cst = arith.constant 1.000000e+00 : f32
    %65 = vector.broadcast %cst : f32 to vector<1x1024xf32>
    %66 = arith.divf %65, %64 : vector<1x1024xf32>
    %67 = arith.mulf %42, %66 : vector<1x1024xf32>
    %68 = arith.mulf %53, %66 : vector<1x1024xf32>
    %cst_12 = arith.constant 4.000000e+00 : f32
    %69 = vector.broadcast %cst_12 : f32 to vector<1x1024xf32>
    %70 = arith.divf %64, %69 : vector<1x1024xf32>
    %cst_13 = arith.constant 2.000000e+00 : f32
    %71 = vector.broadcast %cst_13 : f32 to vector<1x1024xf32>
    %72 = arith.mulf %71, %67 : vector<1x1024xf32>
    %cst_14 = arith.constant 1.000000e+00 : f32
    %73 = vector.broadcast %cst_14 : f32 to vector<1x1024xf32>
    %74 = arith.addf %72, %73 : vector<1x1024xf32>
    %cst_15 = arith.constant 1.280000e+02 : f32
    %75 = vector.broadcast %cst_15 : f32 to vector<1x1024xf32>
    %76 = arith.divf %74, %75 : vector<1x1024xf32>
    %cst_16 = arith.constant -1.000000e+00 : f32
    %77 = vector.broadcast %cst_16 : f32 to vector<1x1024xf32>
    %78 = arith.addf %77, %76 : vector<1x1024xf32>
    %cst_17 = arith.constant 2.000000e+00 : f32
    %79 = vector.broadcast %cst_17 : f32 to vector<1x1024xf32>
    %80 = arith.mulf %79, %68 : vector<1x1024xf32>
    %cst_18 = arith.constant 1.000000e+00 : f32
    %81 = vector.broadcast %cst_18 : f32 to vector<1x1024xf32>
    %82 = arith.addf %80, %81 : vector<1x1024xf32>
    %cst_19 = arith.constant 1.280000e+02 : f32
    %83 = vector.broadcast %cst_19 : f32 to vector<1x1024xf32>
    %84 = arith.divf %82, %83 : vector<1x1024xf32>
    %cst_20 = arith.constant -1.000000e+00 : f32
    %85 = vector.broadcast %cst_20 : f32 to vector<1x1024xf32>
    %86 = arith.addf %85, %84 : vector<1x1024xf32>
    %87 = tpu.concatenate %78, %86, %70 in 0 : vector<1x1024xf32>, vector<1x1024xf32>, vector<1x1024xf32> -> vector<3x1024xf32>
    %c0_21 = arith.constant 0 : index
    %c0_22 = arith.constant 0 : index
    %c0_23 = arith.constant 0 : index
    %88 = vector.load %arg3[%c0_21, %c0_22, %c0_23] : memref<1x3x1024xf32, #tpu.memory_space<vmem>>, vector<1x3x1024xf32>
    %89 = vector.shape_cast %88 : vector<1x3x1024xf32> to vector<3x1024xf32>
    %90 = vector.shape_cast %87 : vector<3x1024xf32> to vector<1x3x1024xf32>
    tpu.vector_store %arg3[%c0_21, %c0_22, %c0_23], %90 {strides = array<i32>} : memref<1x3x1024xf32, #tpu.memory_space<vmem>>, vector<1x3x1024xf32>,
    return
  }
  func.func @transform_0(%arg0: i32) -> (i32, i32) {
    %c0_i32 = arith.constant 0 : i32
    %c0_i32_0 = arith.constant 0 : i32
    %c0_i32_1 = arith.constant 0 : i32
    return %c0_i32, %c0_i32_0 : i32, i32
  }
  func.func @transform_1(%arg0: i32) -> (i32, i32, i32) {
    %c0_i32 = arith.constant 0 : i32
    %c0_i32_0 = arith.constant 0 : i32
    %c0_i32_1 = arith.constant 0 : i32
    return %arg0, %c0_i32, %c0_i32_0 : i32, i32, i32
  }
  func.func @transform_2(%arg0: i32) -> (i32, i32, i32) {
    %c0_i32 = arith.constant 0 : i32
    %c0_i32_0 = arith.constant 0 : i32
    %c0_i32_1 = arith.constant 0 : i32
    return %arg0, %c0_i32, %c0_i32_0 : i32, i32, i32
  }
}

</mosaic_0001>

<bundles_post_ra>
// kernel: tpu_custom_call.1
= control target key start
LH: loop header
LB: loop body
LE: loop exit
PB: predicated region body
PF: predicated region fallthrough
CT: control target
= control target key end

     0   :  { %7 = vsyncpa [#allocation4], 0  ;;  %s887_s0 = inlined_call_operand.hbm [shape: f32[2,16], index: 0, kind: input, shape index: {}]   ;;  %s888_s1 = inlined_call_operand.hbm [shape: f32[2,4,1024], index: 1, kind: input, shape index: {}]   ;;  %s889_s2 = inlined_call_operand.vmem [shape: f32[2,3,1024], index: 2, kind: output, shape index: {}]  }
   0x1   :  { %8 = vsyncpa [#allocation3], 0 }
   0x2   :  { %10 = vsyncpa [#allocation3 + $0x1], 0  ;;  %s665_s9 = smov 0   ;;  %s667_s10 = smov 0  }
   0x3   :  { %s669_s11 = smov 0   ;;  %s671_s12 = smov 0  }
   0x4 LB: > { %s684_s13 = sadd.s32 4294967295, %s646_s12   ;;  %p57_p0 = scmp.ne.s32.totalorder %s638_s10, %s634_s9  ;;  %s646_s12 = sphi %s671_s12, %s903_s12   ;;  %s642_s11 = sphi %s669_s11, %s902_s11   ;;  %s638_s10 = sphi %s667_s10, %s901_s10   ;;  %s634_s9 = sphi %s665_s9, %s900_s9  }
   0x5   : > { %p890_p1 = scmp.eq.s32.totalorder %s684_s13, 0  ;;  %p494_p2 = scmp.ge.s32.totalorder %s646_s12, 1 }
   0x6   : > { %p94_p3 = scmp.lt.s32.totalorder %s646_s12, 3  ;;  %s701_s16 = sadd.s32 1, %s646_s12  }
   0x7   : > { %p692_p4 = por %p890_p1, %p57_p0  ;;  %s41_s17 = ssub.s32 %s646_s12, %s701_s16 }
   0x8   : > { %p696_p5 = pnand %p494_p2, %p94_p3  ;;  %s44_s18 = sadd.s32 1, %s642_s11 }
   0x9   : > { %s892_s14 = scalar_select %p692_p4, 1, 0 }
   0xa   : > { %p519_p6 = pneg %p696_p5  ;;  %p714_p8 = scmp.eq.s32.totalorder %s41_s17, 0 }
   0xb   : > { %p51_p9 = scmp.ne.s32.totalorder %s642_s11, %s638_s10  ;;  %p52_p10 = scmp.eq.s32.totalorder %s646_s12, 0 }
   0xc   : > { %p710_p7 = pnand %p519_p6, %p890_p1  ;;  %p528_p11 = scmp.lt.s32.totalorder %s646_s12, 2 }
   0xd   : > { %s565_s23 = scalar_lea.hbm %s887_s0, 32 }
   0xe   : > { %p566_p12 = scmp.ne.s32.totalorder %s887_s0, %s565_s23  ;;  %p567_p13 = pneg %p710_p7 }
   0xf   : > { %p572_p3 = scmp.lt.u32.totalorder %s565_s23, %s887_s0 }
  0x10   : > { %p568_p0 = pnand %p567_p13, %p566_p12 }
  0x12   : > { %p569_p2 = pneg %p568_p0 }
  0x14   : > { %p574_p6 = pnand %p572_p3, %p569_p2 }
  0x16   : > { %577 = shalt.err (!%p574_p6)
}
  0x17   : > { %s648_s28 = smov [#allocation2]   ;;  %p53_p12 = por %p52_p10, %p51_p9 }
  0x18   : > { %522 = dma.hbm_to_smem (!%p710_p7), %s887_s0, 32, %s648_s28, [#allocation4]  }
  0x19   : > { %s741_s3 = scalar_select %p714_p8, %s642_s11, %s44_s18  }
  0x1a   : > { %s116_s4 = sand.u32 1, %s642_s11   ;;  %s511_s6 = sshll.u32 %s646_s12, 9 }
  0x1b   : > { %s497_s5 = sshll.u32 %s116_s4, 5  ;;  %s753_s9 = scalar_lea.hbm %s888_s1, %s511_s6 }
  0x1c   : > { %s120_s17 = scalar_lea.vmem [#allocation5], %s497_s5  ;;  %p759_p7 = pnand %p528_p11, %p53_p12 }
  0x1d   : > { %s128_s19 = sshll.u32 %s120_s17, 4  ;;  %s117_s20 = scalar_lea.sflag [#allocation3], %s116_s4  ;;  %s755_s19 = int_to_ptr.vmem [resolvable:$true] %s128_s19 }
  0x1e   : > { %s578_s21 = scalar_lea.hbm %s753_s9, 512  ;;  %p580_p9 = pneg %p759_p7 }
  0x1f   : > { %p579_p8 = scmp.ne.s32.totalorder %s753_s9, %s578_s21  ;;  %s583_s24 = scalar_lea.hbm %s888_s1, 1024 }
  0x20   : > { %p584_p11 = scmp.lt.u32.totalorder %s753_s9, %s888_s1  ;;  %p585_p0 = scmp.lt.u32.totalorder %s583_s24, %s578_s21 }
  0x21   : > { %p581_p10 = pnand %p580_p9, %p579_p8  ;;  %p587_p3 = scmp.lt.u32.totalorder %s578_s21, %s753_s9 }
  0x22   : > { %p586_p2 = por %p585_p0, %p584_p11 }
  0x23   : > { %p582_p13 = pneg %p581_p10 }
  0x24   : > { %p588_p6 = por %p587_p3, %p586_p2 }
  0x26   : > { %p589_p12 = pnand %p588_p6, %p582_p13 }
  0x28   : > { %592 = shalt.err (!%p589_p12)
}
  0x29   : > { %s593_s26 = scalar_lea.vmem %s755_s19, 512  ;;  %s649_s27 = smov [#allocation5]  }
  0x2a   : > { %p594_p8 = scmp.ne.s32.totalorder %s755_s19, %s593_s26  ;;  %s598_s28 = sshll.u32 %s649_s27, 4  ;;  %s599_s28 = int_to_ptr.vmem [resolvable:$false] %s598_s28 }
  0x2b   : > { %s600_s29 = scalar_lea.vmem %s599_s28, 1024  ;;  %p601_p4 = scmp.lt.s32.totalorder %s755_s19, %s599_s28 }
  0x2c   : > { %p596_p10 = pnand %p594_p8, %p580_p9  ;;  %p602_p11 = scmp.lt.s32.totalorder %s600_s29, %s593_s26 }
  0x2e   : > { %p597_p1 = pneg %p596_p10  ;;  %p603_p0 = por %p602_p11, %p601_p4 }
  0x30   : > { %p604_p2 = pnand %p603_p0, %p597_p1 }
  0x32   : > { %607 = shalt.err (!%p604_p2)
}
  0x33   : > { %526 = dma.hbm_to_vmem [thread:$0]  (!%p759_p7), %s753_s9, 512, %s755_s19, %s117_s20  }
  0x34   : > { %137 = sbr.rel (%p696_p5) target bundleno = 122 (0x7a), region = 28  ;;  %p897_p9 = scmp.eq.s32.totalorder (!%p696_p5), %s684_s13, 0 }
  0x3b   : > { %625 = dma.done.wait (%p897_p9), [#allocation4], 32   ;;  %p898_p13 = pmov %p897_p9 }
  0x3c   : > { %s143_s30 = sand.u32 1, %s638_s10   ;;  %p899_p1 = scmp.ne.s32.totalorder %s892_s14, 0 }
  0x3d   : > { %627 = vsyncadd (%p898_p13), [#allocation4], 4294967264  ;;  %s502_s4 = sshll.u32 %s143_s30, 5  ;;  %s144_s5 = scalar_lea.sflag [#allocation3], %s143_s30 }
  0x3e   : > { %s795_s6 = scalar_lea.vmem [#allocation5], %s502_s4 }
  0x3f   : > { %629 = dma.done.wait (%p899_p1), %s144_s5, 512  }
  0x40   : > { %631 = vsyncadd (%p899_p1), %s144_s5, 4294966784 }
  0x41   : > { %152 = sfence }
  0x42   : > { %s802_s15 = sshll.u32 %s684_s13, 7  ;;  %v198_v0 = vld [vmem:[%s795_s6] ss:$4 sm:$0xff]  ;;  %v506_v1 = vld [vmem:[%s795_s6 + $0x1] ss:$4 sm:$0xff]  ;;  %v254_v35 = vlaneseq  ;;  %p169_p4 = scmp.lt.s32.totalorder %s684_s13, 1 }
  0x43   : > { %s176_s7 = sadd.s32 1, %s802_s15  ;;  %s182_s8 = sadd.s32 4, %s802_s15  ;;  %v507_v2 = vld [vmem:[%s795_s6 + $0x2] ss:$4 sm:$0xff]  ;;  %v508_v4 = vld [vmem:[%s795_s6 + $0x3] ss:$4 sm:$0xff] }
  0x44   : > { %s807_s9 = sld [smem:[#allocation2 + %s802_s15]]  ;;  %s184_s14 = sadd.s32 5, %s802_s15  ;;  %v255_v39 = vshrl.u32 %v254_v35, 7  ;;  %vm376_vm0 = vcmask 1040384   ;;  %vm385_vm1 = vcmask 1041408  }
  0x45   : > { %s810_s17 = sld [smem:[#allocation2 + %s176_s7]]  ;;  %s178_s19 = sadd.s32 2, %s802_s15 }
  0x46   : > { %s813_s18 = sld [smem:[#allocation2 + %s182_s8]]  ;;  %s186_s21 = sadd.s32 6, %s802_s15  ;;  %v256_v45 = vsub.s32 0, %v255_v39  ;;  %v260_v46 = vsub.s32 1, %v255_v39  ;;  %v264_v49 = vsub.s32 2, %v255_v39  ;;  %v268_v50 = vsub.s32 3, %v255_v39 }
  0x47   : > { %s815_s20 = sld [smem:[#allocation2 + %s184_s14]]  ;;  %s190_s22 = sadd.s32 8, %s802_s15  ;;  %v272_v51 = vsub.s32 4, %v255_v39  ;;  %v276_v52 = vsub.s32 5, %v255_v39  ;;  %v280_v53 = vsub.s32 6, %v255_v39  ;;  %v284_v54 = vsub.s32 7, %v255_v39 }
  0x48   : > { %s191_s23 = sld [smem:[#allocation2 + %s190_s22]]  ;;  %s192_s24 = sadd.s32 9, %s802_s15 }
  0x49   : > { %s193_s12 = sld [smem:[#allocation2 + %s192_s24]]  ;;  %s194_s25 = sadd.s32 10, %s802_s15 }
  0x4a   : > { %s195_s26 = sld [smem:[#allocation2 + %s194_s25]]  ;;  %s196_s27 = sadd.s32 11, %s802_s15  ;;  %v205_v5 = vstv %s807_s9 }
  0x4b   : > { %s197_s28 = sld [smem:[#allocation2 + %s196_s27]]  ;;  %s180_s4 = sadd.s32 3, %s802_s15  ;;  %v207_v6 = vstv %s810_s17  ;;  %v206_v17 = vmul.f32 %v205_v5, %v198_v0 }
  0x4c   : > { %s822_s29 = sld [smem:[#allocation2 + %s178_s19]]  ;;  %s188_s5 = sadd.s32 7, %s802_s15  ;;  %v216_v9 = vstv %s813_s18  ;;  %v208_v18 = vmul.f32 %v506_v1, %v207_v6 }
  0x4d   : > { %s824_s30 = sld [smem:[#allocation2 + %s186_s21]]  ;;  %v218_v10 = vstv %s815_s20  ;;  %v217_v19 = vmul.f32 %v216_v9, %v198_v0  ;;  %s905_s13 = smov (!%p169_p4, %s684_s13), 1 }
  0x4e   : > { %v227_v3 = vstv %s191_s23  ;;  %s181_s7 = sld [smem:[#allocation2 + %s180_s4]]  ;;  %v219_v20 = vmul.f32 %v506_v1, %v218_v10  ;;  %v209_v25 = vadd.f32 %v208_v18, %v206_v17  ;;  %s512_s6 = sshll.u32 %s905_s13, 5 }
  0x4f   : > { %v228_v7 = vmul.f32 %v227_v3, %v198_v0  ;;  %v229_v8 = vstv %s193_s12  ;;  %s189_s8 = sld [smem:[#allocation2 + %s188_s5]]  ;;  %s173_s14 = scalar_lea.vmem %s889_s2, %s512_s6 }
  0x50   : > { %v230_v11 = vmul.f32 %v506_v1, %v229_v8  ;;  %v232_v12 = vstv %s195_s26  ;;  %v220_v27 = vadd.f32 %v219_v20, %v217_v19 }
  0x51   : > { %v233_v13 = vmul.f32 %v507_v2, %v232_v12  ;;  %v235_v14 = vstv %s197_s28 }
  0x52   : > { %v231_v15 = vadd.f32 %v230_v11, %v228_v7  ;;  %v236_v16 = vmul.f32 %v508_v4, %v235_v14  ;;  %v210_v21 = vstv %s822_s29 }
  0x53   : > { %v221_v22 = vstv %s824_s30  ;;  %v211_v26 = vmul.f32 %v507_v2, %v210_v21 }
  0x54   : > { %v234_v23 = vadd.f32 %v233_v13, %v231_v15  ;;  %v222_v28 = vmul.f32 %v507_v2, %v221_v22  ;;  %v213_v29 = vstv %s181_s7 }
  0x55   : > { %v224_v30 = vstv %s189_s8  ;;  %v212_v31 = vadd.f32 %v211_v26, %v209_v25  ;;  %v214_v32 = vmul.f32 %v508_v4, %v213_v29 }
  0x56   : > { %v237_v24 = vadd.f32 %v236_v16, %v234_v23  ;;  %v223_v33 = vadd.f32 %v222_v28, %v220_v27  ;;  %v225_v34 = vmul.f32 %v508_v4, %v224_v30 }
  0x57   : > { %v215_v36 = vadd.f32 %v214_v32, %v212_v31 }
  0x58   : > { %563 = vrcp.f32 %v237_v24  ;;  %v226_v37 = vadd.f32 %v225_v34, %v223_v33  ;;  %v839_v44 = vmul.f32 0.25, %v237_v24 }
  0x5a   : > { %v339_v57 = vrot.slane %v839_v44, %v256_v45  ;;  %v343_v58 = vrot.slane %v839_v44, %v260_v46  ;;  %v347_v61 = vrot.slane %v839_v44, %v264_v49  ;;  %v351_v62 = vrot.slane %v839_v44, %v268_v50 }
  0x5b   : > { %v355_v63 = vrot.slane %v839_v44, %v272_v51  ;;  %v359_v0 = vrot.slane %v839_v44, %v276_v52  ;;  %v363_v1 = vrot.slane %v839_v44, %v280_v53  ;;  %v367_v2 = vrot.slane %v839_v44, %v284_v54 }
  0x62   : > { %v564_v38 = vpop.eup %563 }
  0x63   : > { %v240_v40 = vmul.f32 %v564_v38, %v215_v36  ;;  %v241_v41 = vmul.f32 %v564_v38, %v226_v37 }
  0x65   : > { %v244_v42 = vmul.f32 2.0, %v240_v40  ;;  %v249_v43 = vmul.f32 2.0, %v241_v41 }
  0x67   : > { %v245_v47 = vadd.f32 1.0, %v244_v42  ;;  %v250_v48 = vadd.f32 1.0, %v249_v43 }
  0x69   : > { %v247_v55 = vmul.f32 0.0078125, %v245_v47  ;;  %v251_v56 = vmul.f32 0.0078125, %v250_v48 }
  0x6b   : > { %v248_v59 = vadd.f32 -1.0, %v247_v55  ;;  %v252_v60 = vadd.f32 -1.0, %v251_v56 }
  0x6d   : > { %v257_v3 = vrot.slane %v248_v59, %v256_v45  ;;  %v261_v4 = vrot.slane %v248_v59, %v260_v46  ;;  %v298_v5 = vrot.slane %v252_v60, %v256_v45  ;;  %v302_v6 = vrot.slane %v252_v60, %v260_v46 }
  0x6e   : > { %v265_v7 = vrot.slane %v248_v59, %v264_v49  ;;  %v269_v8 = vrot.slane %v248_v59, %v268_v50  ;;  %v306_v9 = vrot.slane %v252_v60, %v264_v49  ;;  %v310_v10 = vrot.slane %v252_v60, %v268_v50 }
  0x6f   : > { %v377_v11 = vsel %vm376_vm0, %v257_v3, %v298_v5  ;;  %v378_v12 = vsel %vm376_vm0, %v261_v4, %v302_v6  ;;  %v273_v13 = vrot.slane %v248_v59, %v272_v51  ;;  %v277_v14 = vrot.slane %v248_v59, %v276_v52 }
  0x70   : > { %v386_v15 = vsel %vm385_vm1, %v377_v11, %v339_v57  ;;  %v387_v16 = vsel %vm385_vm1, %v378_v12, %v343_v58  ;;  %v379_v17 = vsel %vm376_vm0, %v265_v7, %v306_v9  ;;  %v380_v18 = vsel %vm376_vm0, %v269_v8, %v310_v10 }
  0x71   : > { %v402_v19 = vcombine.low %v386_v15, %v387_v16  ;;  %v388_v20 = vsel %vm385_vm1, %v379_v17, %v347_v61  ;;  %v389_v21 = vsel %vm385_vm1, %v380_v18, %v351_v62  ;;  %v314_v22 = vrot.slane %v252_v60, %v272_v51 }
  0x72   : > { %v403_v23 = vcombine.low %v388_v20, %v389_v21  ;;  %v318_v24 = vrot.slane %v252_v60, %v276_v52  ;;  %v281_v25 = vrot.slane %v248_v59, %v280_v53  ;;  %v285_v26 = vrot.slane %v248_v59, %v284_v54 }
  0x73   : > { %410 = vst [vmem:[%s173_s14] sm:$0x77] %v402_v19  ;;  %v381_v27 = vsel %vm376_vm0, %v273_v13, %v314_v22  ;;  %v322_v28 = vrot.slane %v252_v60, %v280_v53  ;;  %v326_v29 = vrot.slane %v252_v60, %v284_v54 }
  0x74   : > { %411 = vst [vmem:[%s173_s14 + $0x8] sm:$0x77] %v403_v23  ;;  %v382_v30 = vsel %vm376_vm0, %v277_v14, %v318_v24  ;;  %v390_v31 = vsel %vm385_vm1, %v381_v27, %v355_v63 }
  0x75   : > { %v391_v32 = vsel %vm385_vm1, %v382_v30, %v359_v0  ;;  %v383_v33 = vsel %vm376_vm0, %v281_v25, %v322_v28  ;;  %v384_v34 = vsel %vm376_vm0, %v285_v26, %v326_v29 }
  0x76   : > { %v404_v35 = vcombine.low %v390_v31, %v391_v32  ;;  %v392_v36 = vsel %vm385_vm1, %v383_v33, %v363_v1  ;;  %v393_v37 = vsel %vm385_vm1, %v384_v34, %v367_v2 }
  0x77   : > { %v405_v38 = vcombine.low %v392_v36, %v393_v37 }
  0x78   : > { %412 = vst [vmem:[%s173_s14 + $0x10] sm:$0x77] %v404_v35 }
  0x79   : > { %413 = vst [vmem:[%s173_s14 + $0x18] sm:$0x77] %v405_v38 }
  0x7a PF: > { %p13_p5 = scmp.ge.s32.totalorder %s701_s16, 4   ;;  %s900_s9 = smov %s638_s10 }
  0x7b   : > { %s901_s10 = smov %s642_s11  ;;  %s902_s11 = smov %s741_s3 }
  0x7c   : > { %s903_s12 = smov %s701_s16  ;;  %15 = sbr.rel (!%p13_p5) target bundleno = 4 (0x4), region = 76 }
  0x83   :  { %435 = vsyncpa [#allocation3], 1 }
  0x84   :  { %437 = vsyncpa [#allocation3 + $0x1], 1 }
  0x85   :  { %438 = vsyncpa [#allocation4], 1 }
  0x86   :  { %440 = vsyncpa [#allocation4 + $0x1], 1 }

</bundles_post_ra>
